<compile_context>
chip_gen: v6e
topology: v6e:2x2x1
jax: 0.10.0
libtpu: 0.0.40
codegen_flags: <defaults>
</compile_context>

<pallas_src>
import functools

import jax
import jax.numpy as jnp
from jax.experimental import pallas as pl
from jax.experimental.pallas import tpu as pltpu

KSIZE = 5  # conv2d kernel width along the char axis


def _round_up(x, m):
    return ((x + m - 1) // m) * m


def _embedding_kernel(ch_ref, wd_ref, wpair_ref, wcat_ref, whw_ref, bias_ref,
                      out_ref, *, num_windows, cemb_dim, d_model):
    # conv2d(kernel=(1,5), VALID) + bias + relu + max over window positions.
    # Windows fused pairwise: pair p reads chars [2p, 2p+6) (a 128-aligned lane
    # slice for Cc=64) and multiplies a (6*Cc, 2*D) weight whose column block 0
    # holds window 2p and block 1 holds window 2p+1 (row-shifted by Cc).
    num_pairs = num_windows // 2
    has_tail = (num_windows % 2) == 1

    wpair = wpair_ref[...]                                        # (6*Cc, 2D) bf16
    m = None
    for p in range(num_pairs):
        start = 2 * p * cemb_dim
        win = ch_ref[:, start:start + 6 * cemb_dim].astype(jnp.bfloat16)
        y = jnp.dot(win, wpair, preferred_element_type=jnp.float32)  # (TN, 2D)
        m = y if m is None else jnp.maximum(m, y)
    if m is not None:
        m = jnp.maximum(m[:, :d_model], m[:, d_model:])           # (TN, D)
    if has_tail:
        w = num_windows - 1
        win = ch_ref[:, w * cemb_dim:(w + KSIZE) * cemb_dim].astype(jnp.bfloat16)
        y = jnp.dot(win, wpair[:KSIZE * cemb_dim, :d_model],
                    preferred_element_type=jnp.float32)
        m = y if m is None else jnp.maximum(m, y)

    # bias/relu hoisted out of the loop: relu(max_w(dot_w) + b) == max_w(relu(dot_w + b)).
    bconv = bias_ref[0:1, :d_model]                               # (1, D) f32
    ch_feat = jnp.maximum(m + bconv, 0.0)                         # (TN, D) f32

    # "conv1d" = Linear(D + Dw -> D, bias=False) on cat([ch_feat, wd], -1),
    # done as a single K = D+Dw matmul (lane concat is free).
    wd = wd_ref[...].astype(jnp.bfloat16)                         # loaded after conv loop
    xcat = jnp.concatenate([ch_feat.astype(jnp.bfloat16), wd], axis=-1)
    x = jnp.dot(xcat, wcat_ref[...], preferred_element_type=jnp.float32)  # (TN, D) f32

    # Highway(2, D): per layer one fused (D, 2D) matmul -> [linear | gate].
    for i in range(2):
        y = jnp.dot(x.astype(jnp.bfloat16), whw_ref[i],
                    preferred_element_type=jnp.float32) + bias_ref[i + 1:i + 2, :]
        nonlinear = y[:, :d_model]
        gate = jax.nn.sigmoid(y[:, d_model:])
        x = x + gate * (nonlinear - x)        # == gate*nonlinear + (1-gate)*x

    out_ref[...] = x.astype(out_ref.dtype)


def embedding_forward(ch_emb, wd_emb, kp, *, tile_rows=1024):
    B, L, W, Cc = ch_emb.shape
    Dw = wd_emb.shape[-1]
    D = kp["wcat"].shape[-1]
    num_windows = W - KSIZE + 1
    N = B * L

    # Inputs go to the kernel as-is (f32): no extra HBM cast/pad pass.
    ch_flat = ch_emb.reshape(N, W * Cc)
    wd_flat = wd_emb.reshape(N, Dw)

    # Largest tile <= tile_rows (16-row aligned), but keep >= 2 grid steps when
    # N allows it so both v7x TensorCores get work. Ragged last tile is handled
    # by the cdiv grid (masked partial block) -- rows are independent.
    tile = min(tile_rows, max(16, _round_up(pl.cdiv(N, 2), 16)))
    grid = pl.cdiv(N, tile)

    row2 = lambda i: (i, 0)
    full2 = lambda i: (0, 0)
    full3 = lambda i: (0, 0, 0)

    kernel = functools.partial(_embedding_kernel, num_windows=num_windows,
                               cemb_dim=Cc, d_model=D)

    out = pl.pallas_call(
        kernel,
        out_shape=jax.ShapeDtypeStruct((N, D), jnp.bfloat16),
        grid_spec=pltpu.PrefetchScalarGridSpec(
            num_scalar_prefetch=0,
            grid=(grid,),
            in_specs=[
                pl.BlockSpec((tile, W * Cc), row2),     # char rows (f32, flattened)
                pl.BlockSpec((tile, Dw), row2),         # word rows (f32)
                pl.BlockSpec((6 * Cc, 2 * D), full2),   # pairwise-fused conv weight (bf16)
                pl.BlockSpec((D + Dw, D), full2),       # fused conv1d weight (bf16)
                pl.BlockSpec((2, D, 2 * D), full3),     # fused highway weights (bf16)
                pl.BlockSpec((8, 2 * D), full2),        # packed biases (f32)
            ],
            out_specs=pl.BlockSpec((tile, D), row2),
        ),
        compiler_params=pltpu.CompilerParams(dimension_semantics=("parallel",)),
    )(ch_flat, wd_flat, kp["wpair"], kp["wcat"], kp["whw"], kp["bias"])

    return out.reshape(B, L, D)


def init_params(key, wemb_dim, cemb_dim, d_model):
    """Deterministic parameter init mirroring the PyTorch module's shapes."""
    ks = jax.random.split(key, 12)
    fan_in = cemb_dim * 1 * KSIZE
    # nn.Conv2d(cemb_dim, d_model, (1,5)) weight: (d_model, cemb_dim, 1, 5), kaiming normal.
    conv_w = jax.random.normal(ks[0], (d_model, cemb_dim, 1, KSIZE),
                               jnp.float32) * jnp.sqrt(2.0 / fan_in)
    conv_b = 0.02 * jax.random.normal(ks[1], (d_model,), jnp.float32)
    # nn.Linear(wemb_dim + d_model, d_model, bias=False); input order is cat([ch(D), wd(Dw)]).
    lin_w = 0.05 * jax.random.normal(ks[2], (d_model, wemb_dim + d_model), jnp.float32)
    raw = dict(conv_w=conv_w, conv_b=conv_b, lin_w=lin_w)
    for i in range(2):
        raw[f"wl{i}"] = 0.05 * jax.random.normal(ks[3 + 4 * i], (d_model, d_model), jnp.float32)
        raw[f"bl{i}"] = 0.02 * jax.random.normal(ks[4 + 4 * i], (d_model,), jnp.float32)
        raw[f"wg{i}"] = 0.05 * jax.random.normal(ks[5 + 4 * i], (d_model, d_model), jnp.float32)
        raw[f"bg{i}"] = 0.02 * jax.random.normal(ks[6 + 4 * i], (d_model,), jnp.float32)

    # Flattened conv weight: Wflat[k*Cc + c, d] = conv_w[d, c, 0, k]
    # (matches the flattened window order of the char block).
    wflat = jnp.transpose(conv_w[:, :, 0, :], (2, 1, 0)).reshape(KSIZE * cemb_dim, d_model)
    # Pairwise-fused conv weight (6*Cc, 2*D): column block 0 = window at char
    # offset 0, column block 1 = window at char offset +1 (row offset Cc).
    wpair = jnp.zeros((6 * cemb_dim, 2 * d_model), jnp.float32)
    wpair = wpair.at[:KSIZE * cemb_dim, :d_model].set(wflat)
    wpair = wpair.at[cemb_dim:(KSIZE + 1) * cemb_dim, d_model:].set(wflat)

    wcat = lin_w.T                                   # (D+Dw, D): rows 0:D char half, D: word half
    whw = jnp.stack([jnp.concatenate([raw[f"wl{i}"].T, raw[f"wg{i}"].T], axis=1)
                     for i in range(2)])             # (2, D, 2D): [linear | gate]
    bias = jnp.zeros((8, 2 * d_model), jnp.float32)
    bias = bias.at[0, :d_model].set(conv_b)
    for i in range(2):
        bias = bias.at[i + 1, :d_model].set(raw[f"bl{i}"])
        bias = bias.at[i + 1, d_model:].set(raw[f"bg{i}"])

    kp = dict(wpair=wpair.astype(jnp.bfloat16),
              wcat=wcat.astype(jnp.bfloat16),
              whw=whw.astype(jnp.bfloat16),
              bias=bias)
    return raw, kp


def reference_forward(ch_emb, wd_emb, raw):
    """Pure-JAX f32 replica of the PyTorch forward (eval mode) for verification."""
    x = jnp.transpose(ch_emb, (0, 3, 1, 2))                       # NCHW
    y = jax.lax.conv_general_dilated(
        x, raw["conv_w"], (1, 1), "VALID",
        dimension_numbers=("NCHW", "OIHW", "NCHW"))
    y = y + raw["conv_b"][None, :, None, None]
    y = jnp.maximum(y, 0.0)
    y = jnp.max(y, axis=3)                                        # (B, D, L)
    ch = jnp.transpose(y, (0, 2, 1))                              # (B, L, D)
    emb = jnp.concatenate([ch, wd_emb], axis=2)
    emb = emb @ raw["lin_w"].T
    xh = emb
    for i in range(2):
        gate = jax.nn.sigmoid(xh @ raw[f"wg{i}"].T + raw[f"bg{i}"])
        nonlinear = xh @ raw[f"wl{i}"].T + raw[f"bl{i}"]
        xh = gate * nonlinear + (1.0 - gate) * xh
    return xh


if __name__ == "__main__":
    B, L, W = 2, 8, 8          # batch, seq len, chars per word
    cemb_dim, wemb_dim, d_model = 64, 128, 128

    key = jax.random.PRNGKey(0)
    k_ch, k_wd, k_p = jax.random.split(key, 3)
    ch_emb = jax.random.normal(k_ch, (B, L, W, cemb_dim), jnp.float32)
    wd_emb = jax.random.normal(k_wd, (B, L, wemb_dim), jnp.float32)

    raw, kp = init_params(k_p, wemb_dim, cemb_dim, d_model)

    out = embedding_forward(ch_emb, wd_emb, kp, tile_rows=1024)
    out = jax.block_until_ready(out)

    ref = reference_forward(ch_emb, wd_emb, raw)
    assert out.shape == (B, L, d_model)
    # bf16 MXU inputs + bf16 output with f32 accumulation -> loosened tolerance.
    diff = jnp.max(jnp.abs(out.astype(jnp.float32) - ref))
    assert jnp.allclose(out.astype(jnp.float32), ref, atol=6e-2, rtol=6e-2), (
        "mismatch vs reference, max abs diff = %e" % float(diff))

    print("KERNEL_OK")
</pallas_src>

<mosaic_0001>
module attributes {stable_mosaic.version = 11 : i64} {
  func.func @_embedding_kernel(%arg0: i32, %arg1: memref<16x512xf32, #tpu.memory_space<vmem>>, %arg2: memref<16x128xf32, #tpu.memory_space<vmem>>, %arg3: memref<384x256xbf16, #tpu.memory_space<vmem>>, %arg4: memref<256x128xbf16, #tpu.memory_space<vmem>>, %arg5: memref<2x128x256xbf16, #tpu.memory_space<vmem>>, %arg6: memref<8x256xf32, #tpu.memory_space<vmem>>, %arg7: memref<16x128xbf16, #tpu.memory_space<vmem>>) attributes {dimension_semantics = [#tpu.dimension_semantics<parallel>], iteration_bounds = array<i64: 1>, scalar_prefetch = 0 : i64, scratch_operands = 0 : i64, tpu.core_type = #tpu.core_type<tc>, window_params = [{transform_indices = @transform_0, window_bounds = array<i64: 16, 512>}, {transform_indices = @transform_1, window_bounds = array<i64: 16, 128>}, {pipeline_mode = #tpu.pipeline_mode<synchronous>, transform_indices = @transform_2, window_bounds = array<i64: 384, 256>}, {pipeline_mode = #tpu.pipeline_mode<synchronous>, transform_indices = @transform_3, window_bounds = array<i64: 256, 128>}, {pipeline_mode = #tpu.pipeline_mode<synchronous>, transform_indices = @transform_4, window_bounds = array<i64: 2, 128, 256>}, {pipeline_mode = #tpu.pipeline_mode<synchronous>, transform_indices = @transform_5, window_bounds = array<i64: 8, 256>}, {transform_indices = @transform_6, window_bounds = array<i64: 16, 128>}]} {
    %c0 = arith.constant 0 : index
    %c0_0 = arith.constant 0 : index
    %0 = vector.load %arg3[%c0, %c0_0] : memref<384x256xbf16, #tpu.memory_space<vmem>>, vector<384x256xbf16>
    %c0_1 = arith.constant 0 : index
    %c0_2 = arith.constant 0 : index
    %1 = vector.load %arg1[%c0_1, %c0_2] : memref<16x512xf32, #tpu.memory_space<vmem>>, vector<16x384xf32>
    %2 = arith.truncf %1 : vector<16x384xf32> to vector<16x384xbf16>
    %cst = arith.constant dense<0.000000e+00> : vector<16x256xf32>
    %3 = tpu.matmul %2, %0, %cst {dimension_numbers = #tpu.dot_dimension_numbers<[1], [0], [0], [1], [0, 0, 1, 1], [], []>} : vector<16x384xbf16>, vector<384x256xbf16>, vector<16x256xf32> -> vector<16x256xf32>
    %c0_3 = arith.constant 0 : index
    %c128 = arith.constant 128 : index
    %4 = vector.load %arg1[%c0_3, %c128] : memref<16x512xf32, #tpu.memory_space<vmem>>, vector<16x384xf32>
    %5 = arith.truncf %4 : vector<16x384xf32> to vector<16x384xbf16>
    %cst_4 = arith.constant dense<0.000000e+00> : vector<16x256xf32>
    %6 = tpu.matmul %5, %0, %cst_4 {dimension_numbers = #tpu.dot_dimension_numbers<[1], [0], [0], [1], [0, 0, 1, 1], [], []>} : vector<16x384xbf16>, vector<384x256xbf16>, vector<16x256xf32> -> vector<16x256xf32>
    %7 = arith.maximumf %3, %6 : vector<16x256xf32>
    %8 = vector.extract_strided_slice %7 {offsets = [0, 0], sizes = [16, 128], strides = [1, 1]} : vector<16x256xf32> to vector<16x128xf32>
    %9 = vector.extract_strided_slice %7 {offsets = [0, 128], sizes = [16, 128], strides = [1, 1]} : vector<16x256xf32> to vector<16x128xf32>
    %10 = arith.maximumf %8, %9 : vector<16x128xf32>
    %c0_5 = arith.constant 0 : index
    %c0_6 = arith.constant 0 : index
    %11 = vector.load %arg6[%c0_5, %c0_6] : memref<8x256xf32, #tpu.memory_space<vmem>>, vector<1x128xf32>
    %12 = vector.broadcast %11 : vector<1x128xf32> to vector<16x128xf32>
    %13 = arith.addf %10, %12 : vector<16x128xf32>
    %cst_7 = arith.constant 0.000000e+00 : f32
    %14 = vector.broadcast %cst_7 : f32 to vector<16x128xf32>
    %15 = arith.maximumf %13, %14 : vector<16x128xf32>
    %c0_8 = arith.constant 0 : index
    %c0_9 = arith.constant 0 : index
    %16 = vector.load %arg2[%c0_8, %c0_9] : memref<16x128xf32, #tpu.memory_space<vmem>>, vector<16x128xf32>
    %17 = arith.truncf %16 : vector<16x128xf32> to vector<16x128xbf16>
    %18 = arith.truncf %15 : vector<16x128xf32> to vector<16x128xbf16>
    %19 = tpu.concatenate %18, %17 in 1 : vector<16x128xbf16>, vector<16x128xbf16> -> vector<16x256xbf16>
    %c0_10 = arith.constant 0 : index
    %c0_11 = arith.constant 0 : index
    %20 = vector.load %arg4[%c0_10, %c0_11] : memref<256x128xbf16, #tpu.memory_space<vmem>>, vector<256x128xbf16>
    %cst_12 = arith.constant dense<0.000000e+00> : vector<16x128xf32>
    %21 = tpu.matmul %19, %20, %cst_12 {dimension_numbers = #tpu.dot_dimension_numbers<[1], [0], [0], [1], [0, 0, 1, 1], [], []>} : vector<16x256xbf16>, vector<256x128xbf16>, vector<16x128xf32> -> vector<16x128xf32>
    %22 = arith.truncf %21 : vector<16x128xf32> to vector<16x128xbf16>
    %c0_13 = arith.constant 0 : index
    %c0_14 = arith.constant 0 : index
    %c0_15 = arith.constant 0 : index
    %23 = vector.load %arg5[%c0_13, %c0_14, %c0_15] : memref<2x128x256xbf16, #tpu.memory_space<vmem>>, vector<1x128x256xbf16>
    %24 = vector.shape_cast %23 : vector<1x128x256xbf16> to vector<128x256xbf16>
    %cst_16 = arith.constant dense<0.000000e+00> : vector<16x256xf32>
    %25 = tpu.matmul %22, %24, %cst_16 {dimension_numbers = #tpu.dot_dimension_numbers<[1], [0], [0], [1], [0, 0, 1, 1], [], []>} : vector<16x128xbf16>, vector<128x256xbf16>, vector<16x256xf32> -> vector<16x256xf32>
    %c1 = arith.constant 1 : index
    %c0_17 = arith.constant 0 : index
    %26 = vector.load %arg6[%c1, %c0_17] : memref<8x256xf32, #tpu.memory_space<vmem>>, vector<1x256xf32>
    %27 = vector.broadcast %26 : vector<1x256xf32> to vector<16x256xf32>
    %28 = arith.addf %25, %27 : vector<16x256xf32>
    %29 = vector.extract_strided_slice %28 {offsets = [0, 0], sizes = [16, 128], strides = [1, 1]} : vector<16x256xf32> to vector<16x128xf32>
    %30 = vector.extract_strided_slice %28 {offsets = [0, 128], sizes = [16, 128], strides = [1, 1]} : vector<16x256xf32> to vector<16x128xf32>
    %31 = arith.negf %30 : vector<16x128xf32>
    %32 = math.exp %31 : vector<16x128xf32>
    %cst_18 = arith.constant 1.000000e+00 : f32
    %33 = vector.broadcast %cst_18 : f32 to vector<16x128xf32>
    %34 = arith.addf %33, %32 : vector<16x128xf32>
    %35 = arith.divf %33, %34 : vector<16x128xf32>
    %36 = arith.subf %29, %21 : vector<16x128xf32>
    %37 = arith.mulf %35, %36 : vector<16x128xf32>
    %38 = arith.addf %21, %37 : vector<16x128xf32>
    %39 = arith.truncf %38 : vector<16x128xf32> to vector<16x128xbf16>
    %c1_19 = arith.constant 1 : index
    %c0_20 = arith.constant 0 : index
    %c0_21 = arith.constant 0 : index
    %40 = vector.load %arg5[%c1_19, %c0_20, %c0_21] : memref<2x128x256xbf16, #tpu.memory_space<vmem>>, vector<1x128x256xbf16>
    %41 = vector.shape_cast %40 : vector<1x128x256xbf16> to vector<128x256xbf16>
    %cst_22 = arith.constant dense<0.000000e+00> : vector<16x256xf32>
    %42 = tpu.matmul %39, %41, %cst_22 {dimension_numbers = #tpu.dot_dimension_numbers<[1], [0], [0], [1], [0, 0, 1, 1], [], []>} : vector<16x128xbf16>, vector<128x256xbf16>, vector<16x256xf32> -> vector<16x256xf32>
    %c2 = arith.constant 2 : index
    %c0_23 = arith.constant 0 : index
    %43 = vector.load %arg6[%c2, %c0_23] : memref<8x256xf32, #tpu.memory_space<vmem>>, vector<1x256xf32>
    %44 = vector.broadcast %43 : vector<1x256xf32> to vector<16x256xf32>
    %45 = arith.addf %42, %44 : vector<16x256xf32>
    %46 = vector.extract_strided_slice %45 {offsets = [0, 0], sizes = [16, 128], strides = [1, 1]} : vector<16x256xf32> to vector<16x128xf32>
    %47 = vector.extract_strided_slice %45 {offsets = [0, 128], sizes = [16, 128], strides = [1, 1]} : vector<16x256xf32> to vector<16x128xf32>
    %48 = arith.negf %47 : vector<16x128xf32>
    %49 = math.exp %48 : vector<16x128xf32>
    %cst_24 = arith.constant 1.000000e+00 : f32
    %50 = vector.broadcast %cst_24 : f32 to vector<16x128xf32>
    %51 = arith.addf %50, %49 : vector<16x128xf32>
    %52 = arith.divf %50, %51 : vector<16x128xf32>
    %53 = arith.subf %46, %38 : vector<16x128xf32>
    %54 = arith.mulf %52, %53 : vector<16x128xf32>
    %55 = arith.addf %38, %54 : vector<16x128xf32>
    %56 = arith.truncf %55 : vector<16x128xf32> to vector<16x128xbf16>
    %c0_25 = arith.constant 0 : index
    %c0_26 = arith.constant 0 : index
    %57 = vector.load %arg7[%c0_25, %c0_26] : memref<16x128xbf16, #tpu.memory_space<vmem>>, vector<16x128xbf16>
    tpu.vector_store %arg7[%c0_25, %c0_26], %56 {strides = array<i32>} : memref<16x128xbf16, #tpu.memory_space<vmem>>, vector<16x128xbf16>,
    return
  }
  func.func @transform_0(%arg0: i32) -> (i32, i32) {
    %c0_i32 = arith.constant 0 : i32
    %c0_i32_0 = arith.constant 0 : i32
    return %arg0, %c0_i32 : i32, i32
  }
  func.func @transform_1(%arg0: i32) -> (i32, i32) {
    %c0_i32 = arith.constant 0 : i32
    %c0_i32_0 = arith.constant 0 : i32
    return %arg0, %c0_i32 : i32, i32
  }
  func.func @transform_2(%arg0: i32) -> (i32, i32) {
    %c0_i32 = arith.constant 0 : i32
    %c0_i32_0 = arith.constant 0 : i32
    %c0_i32_1 = arith.constant 0 : i32
    return %c0_i32, %c0_i32_0 : i32, i32
  }
  func.func @transform_3(%arg0: i32) -> (i32, i32) {
    %c0_i32 = arith.constant 0 : i32
    %c0_i32_0 = arith.constant 0 : i32
    %c0_i32_1 = arith.constant 0 : i32
    return %c0_i32, %c0_i32_0 : i32, i32
  }
  func.func @transform_4(%arg0: i32) -> (i32, i32, i32) {
    %c0_i32 = arith.constant 0 : i32
    %c0_i32_0 = arith.constant 0 : i32
    %c0_i32_1 = arith.constant 0 : i32
    %c0_i32_2 = arith.constant 0 : i32
    return %c0_i32, %c0_i32_0, %c0_i32_1 : i32, i32, i32
  }
  func.func @transform_5(%arg0: i32) -> (i32, i32) {
    %c0_i32 = arith.constant 0 : i32
    %c0_i32_0 = arith.constant 0 : i32
    %c0_i32_1 = arith.constant 0 : i32
    return %c0_i32, %c0_i32_0 : i32, i32
  }
  func.func @transform_6(%arg0: i32) -> (i32, i32) {
    %c0_i32 = arith.constant 0 : i32
    %c0_i32_0 = arith.constant 0 : i32
    return %arg0, %c0_i32 : i32, i32
  }
}

</mosaic_0001>

<bundles_post_ra>
// kernel: tpu_custom_call.1
= control target key start
LH: loop header
LB: loop body
LE: loop exit
PB: predicated region body
PF: predicated region fallthrough
CT: control target
= control target key end

     0   :  { %11 = vsyncpa [#allocation3], 0  ;;  %s1818_s0 = inlined_call_operand.hbm [shape: f32[16,512], index: 0, kind: input, shape index: {}]   ;;  %s1819_s1 = inlined_call_operand.hbm [shape: f32[16,128], index: 1, kind: input, shape index: {}]   ;;  %s1820_s2 = inlined_call_operand.hbm [shape: bf16[384,256], index: 2, kind: input, shape index: {}]   ;;  %s1821_s3 = inlined_call_operand.hbm [shape: bf16[256,128], index: 3, kind: input, shape index: {}]   ;;  %s1822_s4 = inlined_call_operand.hbm [shape: bf16[2,128,256], index: 4, kind: input, shape index: {}]   ;;  %s1823_s5 = inlined_call_operand.hbm [shape: f32[8,256], index: 5, kind: input, shape index: {}]   ;;  %s1824_s6 = inlined_call_operand.hbm [shape: bf16[16,128], index: 6, kind: output, shape index: {}]  }
   0x1   :  { %12 = vsyncpa [#allocation6], 0 }
   0x2   :  { %13 = vsyncpa [#allocation9], 0 }
   0x3   :  { %14 = vsyncpa [#allocation12], 0 }
   0x4   :  { %15 = vsyncpa [#allocation4], 0  ;;  %s1587_s21 = smov [#allocation5]  }
   0x5   :  { %s33_s22 = sshll.u32 %s1587_s21, 4  ;;  %s34_s22 = int_to_ptr.vmem [resolvable:$true] %s33_s22 }
   0x6   :  { %s1445_s23 = scalar_lea.vmem %s34_s22, 256  ;;  %p1450_p1 = scmp.lt.s32.totalorder %s34_s22, %s34_s22 }
   0x7   :  { %p1446_p0 = scmp.ne.s32.totalorder %s34_s22, %s1445_s23  ;;  %p1451_p2 = scmp.lt.s32.totalorder %s1445_s23, %s1445_s23 }
   0x9   :  { %p1452_p3 = por %p1451_p2, %p1450_p1 }
   0xb   :  { %p1453_p4 = pnand %p1452_p3, %p1446_p0 }
   0xd   :  { %1456 = shalt.err (!%p1453_p4)
}
   0xe   :  { %s1588_s24 = smov 128   ;;  %s1589_s25 = smov 8  }
   0xf   :  { %39 = dma.hbm_to_vmem [thread:$0]  %s1819_s1, 256, %s34_s22, [#allocation6], %s1588_s24, %s1588_s24, %s1589_s25  }
  0x10   :  { %s1590_s28 = smov [#allocation8]  }
  0x11   :  { %s57_s29 = sshll.u32 %s1590_s28, 4  ;;  %s58_s29 = int_to_ptr.vmem [resolvable:$true] %s57_s29 }
  0x12   :  { %s1465_s30 = scalar_lea.vmem %s58_s29, 2048  ;;  %p1470_p6 = scmp.lt.s32.totalorder %s58_s29, %s58_s29 }
  0x13   :  { %p1466_p5 = scmp.ne.s32.totalorder %s58_s29, %s1465_s30  ;;  %p1471_p7 = scmp.lt.s32.totalorder %s1465_s30, %s1465_s30 }
  0x15   :  { %p1472_p8 = por %p1471_p7, %p1470_p6 }
  0x17   :  { %p1473_p9 = pnand %p1472_p8, %p1466_p5 }
  0x19   :  { %1476 = shalt.err (!%p1473_p9)
}
  0x1a   :  { %s1591_s7 = smov 64   ;;  %s1592_s8 = smov 4  }
  0x1b   :  { %63 = dma.hbm_to_vmem [thread:$0]  %s1821_s3, 2048, %s58_s29, [#allocation9], %s1591_s7, %s1591_s7, %s1592_s8  }
  0x1c   :  { %s1593_s1 = smov [#allocation2]  }
  0x1d   :  { %s21_s11 = sshll.u32 %s1593_s1, 4  ;;  %s22_s11 = int_to_ptr.vmem [resolvable:$true] %s21_s11 }
  0x1e   :  { %s1485_s12 = scalar_lea.vmem %s22_s11, 1024  ;;  %p1490_p11 = scmp.lt.s32.totalorder %s22_s11, %s22_s11 }
  0x1f   :  { %p1486_p10 = scmp.ne.s32.totalorder %s22_s11, %s1485_s12  ;;  %p1491_p12 = scmp.lt.s32.totalorder %s1485_s12, %s1485_s12 }
  0x21   :  { %p1492_p13 = por %p1491_p12, %p1490_p11 }
  0x23   :  { %p1493_p0 = pnand %p1492_p13, %p1486_p10 }
  0x25   :  { %1496 = shalt.err (!%p1493_p0)
}
  0x26   :  { %s1594_s13 = smov 512   ;;  %s1595_s14 = smov 32  }
  0x27   :  { %27 = dma.hbm_to_vmem [thread:$0]  %s1818_s0, 1024, %s22_s11, [#allocation3], %s1594_s13, %s1594_s13, %s1595_s14  }
  0x28   :  { %s1596_s17 = smov [#allocation7]   ;;  %s1597_s3 = smov [#allocation10]  }
  0x29   :  { %s45_s18 = sshll.u32 %s1596_s17, 4  ;;  %s69_s19 = sshll.u32 %s1597_s3, 4  ;;  %s46_s18 = int_to_ptr.vmem [resolvable:$true] %s45_s18  ;;  %s70_s19 = int_to_ptr.vmem [resolvable:$true] %s69_s19 }
  0x2a   :  { %s1505_s20 = scalar_lea.vmem %s46_s18, 6144  ;;  %p1510_p2 = scmp.lt.s32.totalorder %s46_s18, %s46_s18 }
  0x2b   :  { %p1506_p1 = scmp.ne.s32.totalorder %s46_s18, %s1505_s20  ;;  %p1511_p3 = scmp.lt.s32.totalorder %s1505_s20, %s1505_s20 }
  0x2d   :  { %p1512_p4 = por %p1511_p3, %p1510_p2 }
  0x2f   :  { %p1513_p5 = pnand %p1512_p4, %p1506_p1 }
  0x31   :  { %1516 = shalt.err (!%p1513_p5)
}
  0x32   :  { %51 = dma.hbm_to_vmem [thread:$0]  %s1820_s2, 6144, %s46_s18, [#allocation6], %s1588_s24, %s1588_s24, %s1589_s25  }
  0x33   :  { %s1525_s0 = scalar_lea.vmem %s70_s19, 4096  ;;  %p1530_p7 = scmp.lt.s32.totalorder %s70_s19, %s70_s19 }
  0x34   :  { %p1526_p6 = scmp.ne.s32.totalorder %s70_s19, %s1525_s0  ;;  %p1531_p8 = scmp.lt.s32.totalorder %s1525_s0, %s1525_s0 }
  0x36   :  { %p1532_p9 = por %p1531_p8, %p1530_p7 }
  0x38   :  { %p1533_p10 = pnand %p1532_p9, %p1526_p6 }
  0x3a   :  { %1536 = shalt.err (!%p1533_p10)
}
  0x3b   :  { %75 = dma.hbm_to_vmem [thread:$0]  %s1822_s4, 4096, %s70_s19, [#allocation9], %s1588_s24, %s1588_s24, %s1589_s25  }
  0x3c   :  { %s1598_s27 = smov [#allocation11]  }
  0x3d   :  { %s82_s28 = sshll.u32 %s1598_s27, 4  ;;  %s83_s28 = int_to_ptr.vmem [resolvable:$true] %s82_s28 }
  0x3e   :  { %s1545_s29 = scalar_lea.vmem %s83_s28, 256  ;;  %p1550_p12 = scmp.lt.s32.totalorder %s83_s28, %s83_s28 }
  0x3f   :  { %p1546_p11 = scmp.ne.s32.totalorder %s83_s28, %s1545_s29  ;;  %p1551_p13 = scmp.lt.s32.totalorder %s1545_s29, %s1545_s29 }
  0x41   :  { %p1552_p0 = por %p1551_p13, %p1550_p12 }
  0x43   :  { %p1553_p1 = pnand %p1552_p0, %p1546_p11 }
  0x45   :  { %1556 = shalt.err (!%p1553_p1)
}
  0x46   :  { %85 = dma.hbm_to_vmem [thread:$0]  %s1823_s5, 256, %s83_s28, [#allocation12]  }
  0x47   :  { %1577 = dma.done.wait [#allocation3], 1024  }
  0x48   :  { %1578 = vsyncadd [#allocation3], 4294966272 }
  0x49   :  { %1579 = dma.done.wait [#allocation6], 6400  }
  0x4a   :  { %1580 = vsyncadd [#allocation6], 4294960896 }
  0x4b   :  { %1581 = dma.done.wait [#allocation9], 6144  }
  0x4c   :  { %1582 = vsyncadd [#allocation9], 4294961152 }
  0x4d   :  { %1583 = dma.done.wait [#allocation12], 256  }
  0x4e   :  { %1584 = vsyncadd [#allocation12], 4294967040  ;;  %v1599_v0 = vmov 0   ;;  %v1667_v1 = vld [vmem:[#allocation7 + $0x74] ss:$8 sps:$4 sm:$0xff]   ;;  %v155_v33 = vld [vmem:[#allocation2 + $0x10] sm:$0xff] }
  0x4f   :  { %477 = vmatprep.mubr.bf16.mxu1 %v1599_v0  ;;  %v1669_v2 = vld [vmem:[#allocation7 + $0x174] ss:$8 sps:$4 sm:$0xff]   ;;  %402 = vmatprep.subr.bf16.mxu0 %v1667_v1  ;;  %v1672_v3 = vld [vmem:[#allocation7 + $0x70] ss:$8 sps:$4 sm:$0xff]   ;;  %v1677_v5 = vld [vmem:[#allocation7 + $0x64] ss:$8 sps:$4 sm:$0xff]  }
  0x50   :  { %v1674_v4 = vld [vmem:[#allocation7 + $0x170] ss:$8 sps:$4 sm:$0xff]   ;;  %445 = vmatprep.subr.bf16.mxu1 %v1669_v2  ;;  %403 = vmatpush1.bf16.msra.mxu0 %v1672_v3  ;;  %v1681_v6 = vld [vmem:[#allocation7 + $0x164] ss:$8 sps:$4 sm:$0xff]   ;;  %v1683_v7 = vld [vmem:[#allocation7 + $0x60] ss:$8 sps:$4 sm:$0xff]  }
  0x51   :  { %446 = vmatpush1.bf16.msra.mxu1 %v1674_v4  ;;  %404 = vmatprep.subr.bf16.mxu0 %v1677_v5  ;;  %v1686_v8 = vld [vmem:[#allocation7 + $0x160] ss:$8 sps:$4 sm:$0xff]   ;;  %v1689_v9 = vld [vmem:[#allocation7 + $0x54] ss:$8 sps:$4 sm:$0xff]   ;;  %v1693_v11 = vld [vmem:[#allocation7 + $0x50] ss:$8 sps:$4 sm:$0xff]  }
  0x52   :  { %447 = vmatprep.subr.bf16.mxu1 %v1681_v6  ;;  %v1691_v10 = vld [vmem:[#allocation7 + $0x154] ss:$8 sps:$4 sm:$0xff]   ;;  %v1695_v12 = vld [vmem:[#allocation7 + $0x150] ss:$8 sps:$4 sm:$0xff]   ;;  %v1699_v13 = vld [vmem:[#allocation7 + $0x44] ss:$8 sps:$4 sm:$0xff]  }
  0x53   :  { %v1703_v14 = vld [vmem:[#allocation7 + $0x144] ss:$8 sps:$4 sm:$0xff]   ;;  %v1705_v15 = vld [vmem:[#allocation7 + $0x40] ss:$8 sps:$4 sm:$0xff]   ;;  %v1711_v17 = vld [vmem:[#allocation7 + $0x34] ss:$8 sps:$4 sm:$0xff]  }
  0x54   :  { %405 = vmatpush1.bf16.msra.mxu0 %v1683_v7  ;;  %v1709_v16 = vld [vmem:[#allocation7 + $0x140] ss:$8 sps:$4 sm:$0xff]   ;;  %v1715_v18 = vld [vmem:[#allocation7 + $0x134] ss:$8 sps:$4 sm:$0xff]   ;;  %v1717_v19 = vld [vmem:[#allocation7 + $0x30] ss:$8 sps:$4 sm:$0xff]  }
  0x55   :  { %448 = vmatpush1.bf16.msra.mxu1 %v1686_v8  ;;  %406 = vmatprep.subr.bf16.mxu0 %v1689_v9  ;;  %v1719_v20 = vld [vmem:[#allocation7 + $0x130] ss:$8 sps:$4 sm:$0xff]   ;;  %v1723_v21 = vld [vmem:[#allocation7 + $0x24] ss:$8 sps:$4 sm:$0xff]   ;;  %v1729_v23 = vld [vmem:[#allocation7 + $0x20] ss:$8 sps:$4 sm:$0xff]  }
  0x56   :  { %449 = vmatprep.subr.bf16.mxu1 %v1691_v10  ;;  %v1727_v22 = vld [vmem:[#allocation7 + $0x124] ss:$8 sps:$4 sm:$0xff]   ;;  %v1733_v24 = vld [vmem:[#allocation7 + $0x120] ss:$8 sps:$4 sm:$0xff]   ;;  %v1735_v25 = vld [vmem:[#allocation7 + $0x14] ss:$8 sps:$4 sm:$0xff]  }
  0x57   :  { %v1739_v26 = vld [vmem:[#allocation7 + $0x114] ss:$8 sps:$4 sm:$0xff]   ;;  %v1743_v27 = vld [vmem:[#allocation7 + $0x10] ss:$8 sps:$4 sm:$0xff]   ;;  %v1749_v29 = vld [vmem:[#allocation7 + $0x4] ss:$8 sps:$4 sm:$0xff]  }
  0x58   :  { %407 = vmatpush1.bf16.msra.mxu0 %v1693_v11  ;;  %v1745_v28 = vld [vmem:[#allocation7 + $0x110] ss:$8 sps:$4 sm:$0xff]   ;;  %v1751_v30 = vld [vmem:[#allocation7 + $0x104] ss:$8 sps:$4 sm:$0xff]   ;;  %v1753_v31 = vld [vmem:[#allocation7] ss:$8 sps:$4 sm:$0xff]  }
  0x59   :  { %450 = vmatpush1.bf16.msra.mxu1 %v1695_v12  ;;  %408 = vmatprep.subr.bf16.mxu0 %v1699_v13  ;;  %v1755_v32 = vld [vmem:[#allocation7 + $0x100] ss:$8 sps:$4 sm:$0xff]   ;;  %v1333_v35 = vld [vmem:[#allocation7 + $0xf4] ss:$8 sps:$4 sm:$0xff]   ;;  %v1335_v37 = vld [vmem:[#allocation7 + $0xf0] ss:$8 sps:$4 sm:$0xff]  }
  0x5a   :  { %451 = vmatprep.subr.bf16.mxu1 %v1703_v14  ;;  %v158_v34 = vld [vmem:[#allocation2 + $0x30] sm:$0xff]  ;;  %v154_v38 = vld [vmem:[#allocation2 + $0x8] sm:$0xff]  ;;  %v153_v55 = vld [vmem:[#allocation2] sm:$0xff]  ;;  %s1600_s4 = smov [#allocation13]  }
  0x5b   :  { %v161_v36 = vpack.c.bf16 %v158_v34, %v155_v33  ;;  %v1336_v39 = vld [vmem:[#allocation7 + $0xe4] ss:$8 sps:$4 sm:$0xff]   ;;  %v157_v40 = vld [vmem:[#allocation2 + $0x28] sm:$0xff]  ;;  %v1338_v41 = vld [vmem:[#allocation7 + $0xe0] ss:$8 sps:$4 sm:$0xff]   ;;  %s1125_s5 = sshll.u32 %s1600_s4, 4  ;;  %s1126_s5 = int_to_ptr.vmem [resolvable:$true] %s1125_s5 }
  0x5c   :  { %409 = vmatpush1.bf16.msra.mxu0 %v1705_v15  ;;  %v1764_v42 = vpack.c.bf16 %v157_v40, %v154_v38  ;;  %v1339_v43 = vld [vmem:[#allocation7 + $0xd4] ss:$8 sps:$4 sm:$0xff]   ;;  %v1341_v44 = vld [vmem:[#allocation7 + $0xd0] ss:$8 sps:$4 sm:$0xff]   ;;  %v1342_v45 = vld [vmem:[#allocation7 + $0xc4] ss:$8 sps:$4 sm:$0xff]   ;;  %p1562_p3 = scmp.lt.s32.totalorder %s1126_s5, %s1126_s5 }
  0x5d   :  { %452 = vmatpush1.bf16.msra.mxu1 %v1709_v16  ;;  %410 = vmatprep.subr.bf16.mxu0 %v1711_v17  ;;  %v1344_v46 = vld [vmem:[#allocation7 + $0xc0] ss:$8 sps:$4 sm:$0xff]   ;;  %v1345_v47 = vld [vmem:[#allocation7 + $0xb4] ss:$8 sps:$4 sm:$0xff]   ;;  %v1347_v48 = vld [vmem:[#allocation7 + $0xb0] ss:$8 sps:$4 sm:$0xff]  }
  0x5e   :  { %453 = vmatprep.subr.bf16.mxu1 %v1715_v18  ;;  %434 = vmatprep.mubr.bf16.mxu0 %v1764_v42  ;;  %v1348_v49 = vld [vmem:[#allocation7 + $0xa4] ss:$8 sps:$4 sm:$0xff]   ;;  %v1350_v50 = vld [vmem:[#allocation7 + $0xa0] ss:$8 sps:$4 sm:$0xff]   ;;  %v1351_v51 = vld [vmem:[#allocation7 + $0x94] ss:$8 sps:$4 sm:$0xff]  }
  0x5f   :  { %v1353_v52 = vld [vmem:[#allocation7 + $0x90] ss:$8 sps:$4 sm:$0xff]   ;;  %v1354_v53 = vld [vmem:[#allocation7 + $0x84] ss:$8 sps:$4 sm:$0xff]   ;;  %v1356_v54 = vld [vmem:[#allocation7 + $0x80] ss:$8 sps:$4 sm:$0xff]  }
  0x60   :  { %411 = vmatpush1.bf16.msra.mxu0 %v1717_v19  ;;  %v156_v56 = vld [vmem:[#allocation2 + $0x20] sm:$0xff]  ;;  %v490_v58 = vld [vmem:[#allocation2 + $0x18] sm:$0xff]  ;;  %v1357_v61 = vld [vmem:[#allocation8 + $0x78] sm:$0xff]   ;;  %s1557_s24 = scalar_lea.vmem %s1126_s5, 128 }
  0x61   :  { %454 = vmatpush1.bf16.msra.mxu1 %v1719_v20  ;;  %412 = vmatprep.subr.bf16.mxu0 %v1723_v21  ;;  %v159_v57 = vpack.c.bf16 %v156_v56, %v153_v55  ;;  %v493_v59 = vld [vmem:[#allocation2 + $0x38] sm:$0xff]  ;;  %v1358_v62 = vld [vmem:[#allocation8 + $0x38] sm:$0xff]   ;;  %v1359_v63 = vld [vmem:[#allocation8 + $0x70] sm:$0xff]   ;;  %p1558_p2 = scmp.ne.s32.totalorder %s1126_s5, %s1557_s24  ;;  %p1563_p4 = scmp.lt.s32.totalorder %s1557_s24, %s1557_s24 }
  0x62   :  { %455 = vmatprep.subr.bf16.mxu1 %v1727_v22  ;;  %v496_v60 = vpack.c.bf16 %v493_v59, %v490_v58  ;;  %v589_v56 = vld [vmem:[#allocation11] ss:$0 sm:$0xff] }
  0x63   :  { %p1564_p5 = por %p1563_p4, %p1562_p3 }
  0x64   :  { %413 = vmatpush1.bf16.msra.mxu0 %v1729_v23 }
  0x65   :  { %456 = vmatpush1.bf16.msra.mxu1 %v1733_v24  ;;  %414 = vmatprep.subr.bf16.mxu0 %v1735_v25  ;;  %p1565_p6 = pnand %p1564_p5, %p1558_p2 }
  0x66   :  { %457 = vmatprep.subr.bf16.mxu1 %v1739_v26 }
  0x68   :  { %415 = vmatpush1.bf16.msra.mxu0 %v1743_v27 }
  0x69   :  { %458 = vmatpush1.bf16.msra.mxu1 %v1745_v28  ;;  %416 = vmatprep.subr.bf16.mxu0 %v1749_v29 }
  0x6a   :  { %459 = vmatprep.subr.bf16.mxu1 %v1751_v30 }
  0x6c   :  { %417 = vmatpush1.bf16.msra.mxu0 %v1753_v31 }
  0x6d   :  { %460 = vmatpush1.bf16.msra.mxu1 %v1755_v32  ;;  %418 = vmatprep.subr.bf16.mxu0 %v1333_v35 }
  0x6e   :  { %497 = vmatprep.subr.bf16.mxu1 %v1667_v1  ;;  %v1360_v1 = vld [vmem:[#allocation8 + $0x30] sm:$0xff]  }
  0x70   :  { %478 = vmatmul.mubr.bf16.vlgmr.msra.gmra.mxu1 %v161_v36  ;;  %419 = vmatpush2.bf16.msra.mxu0 %v1335_v37 }
  0x71   :  { %498 = vmatpush1.bf16.msra.mxu1 %v1672_v3  ;;  %420 = vmatprep.subr.bf16.mxu0 %v1336_v39  ;;  %v1362_v3 = vld [vmem:[#allocation8 + $0x28] sm:$0xff]  }
  0x72   :  { %499 = vmatprep.subr.bf16.mxu1 %v1677_v5  ;;  %529 = vmatprep.mubr.bf16.mxu1 %v161_v36  ;;  %v1364_v5 = vld [vmem:[#allocation8 + $0x20] sm:$0xff]  }
  0x74   :  { %421 = vmatpush2.bf16.msra.mxu0 %v1338_v41 }
  0x75   :  { %500 = vmatpush1.bf16.msra.mxu1 %v1683_v7  ;;  %422 = vmatprep.subr.bf16.mxu0 %v1339_v43  ;;  %v1366_v7 = vld [vmem:[#allocation8 + $0x18] sm:$0xff]  }
  0x76   :  { %501 = vmatprep.subr.bf16.mxu1 %v1689_v9  ;;  %v1368_v9 = vld [vmem:[#allocation8 + $0x10] sm:$0xff]  }
  0x78   :  { %423 = vmatpush2.bf16.msra.mxu0 %v1341_v44 }
  0x79   :  { %502 = vmatpush1.bf16.msra.mxu1 %v1693_v11  ;;  %424 = vmatprep.subr.bf16.mxu0 %v1342_v45  ;;  %v1370_v11 = vld [vmem:[#allocation8 + $0x8] sm:$0xff]  }
  0x7a   :  { %503 = vmatprep.subr.bf16.mxu1 %v1699_v13  ;;  %v1372_v13 = vld [vmem:[#allocation8] sm:$0xff]  }
  0x7c   :  { %425 = vmatpush2.bf16.msra.mxu0 %v1344_v46 }
  0x7d   :  { %504 = vmatpush1.bf16.msra.mxu1 %v1705_v15  ;;  %426 = vmatprep.subr.bf16.mxu0 %v1345_v47  ;;  %v595_v15 = vld [vmem:[#allocation5 + $0x8] sm:$0xff] }
  0x7e   :  { %505 = vmatprep.subr.bf16.mxu1 %v1711_v17  ;;  %v1373_v17 = vld [vmem:[#allocation10 + $0x70] ss:$8 sps:$4 sm:$0xff]  }
  0x80   :  { %427 = vmatpush2.bf16.msra.mxu0 %v1347_v48 }
  0x81   :  { %506 = vmatpush1.bf16.msra.mxu1 %v1717_v19  ;;  %428 = vmatprep.subr.bf16.mxu0 %v1348_v49  ;;  %v1378_v19 = vld [vmem:[#allocation10 + $0x64] ss:$8 sps:$4 sm:$0xff]  }
  0x82   :  { %507 = vmatprep.subr.bf16.mxu1 %v1723_v21  ;;  %v1381_v21 = vld [vmem:[#allocation10 + $0x54] ss:$8 sps:$4 sm:$0xff]  }
  0x84   :  { %429 = vmatpush2.bf16.msra.mxu0 %v1350_v50 }
  0x85   :  { %508 = vmatpush1.bf16.msra.mxu1 %v1729_v23  ;;  %430 = vmatprep.subr.bf16.mxu0 %v1351_v51  ;;  %v1384_v23 = vld [vmem:[#allocation10 + $0x44] ss:$8 sps:$4 sm:$0xff]  }
  0x86   :  { %509 = vmatprep.subr.bf16.mxu1 %v1735_v25  ;;  %v1387_v25 = vld [vmem:[#allocation10 + $0x34] ss:$8 sps:$4 sm:$0xff]  }
  0x88   :  { %431 = vmatpush2.bf16.msra.mxu0 %v1353_v52 }
  0x89   :  { %510 = vmatpush1.bf16.msra.mxu1 %v1743_v27  ;;  %432 = vmatprep.subr.bf16.mxu0 %v1354_v53  ;;  %v1390_v27 = vld [vmem:[#allocation10 + $0x24] ss:$8 sps:$4 sm:$0xff]  }
  0x8a   :  { %511 = vmatprep.subr.bf16.mxu1 %v1749_v29 }
  0x8c   :  { %433 = vmatpush2.bf16.msra.mxu0 %v1356_v54 }
  0x8d   :  { %512 = vmatpush1.bf16.msra.mxu1 %v1753_v31  ;;  %540 = vmatprep.subr.bf16.mxu0 %v1669_v2  ;;  %v1361_v2 = vld [vmem:[#allocation8 + $0x68] sm:$0xff]  }
  0x8e   :  { %513 = vmatprep.subr.bf16.mxu1 %v1333_v35 }
  0x8f   :  { %435 = vmatmul.mubr.bf16.vlgmr.msra.gmra.mxu0 %v159_v57 }
  0x90   :  { %541 = vmatpush1.bf16.msra.mxu0 %v1674_v4  ;;  %572 = vmatprep.mubr.bf16.mxu0 %v1599_v0  ;;  %v1363_v4 = vld [vmem:[#allocation8 + $0x60] sm:$0xff]  }
  0x91   :  { %514 = vmatpush2.bf16.msra.mxu1 %v1335_v37  ;;  %542 = vmatprep.subr.bf16.mxu0 %v1681_v6  ;;  %v1365_v6 = vld [vmem:[#allocation8 + $0x58] sm:$0xff]  }
  0x92   :  { %515 = vmatprep.subr.bf16.mxu1 %v1336_v39 }
  0x94   :  { %543 = vmatpush1.bf16.msra.mxu0 %v1686_v8  ;;  %v1367_v8 = vld [vmem:[#allocation8 + $0x50] sm:$0xff]  }
  0x95   :  { %516 = vmatpush2.bf16.msra.mxu1 %v1338_v41  ;;  %544 = vmatprep.subr.bf16.mxu0 %v1691_v10  ;;  %v1369_v10 = vld [vmem:[#allocation8 + $0x48] sm:$0xff]  }
  0x96   :  { %517 = vmatprep.subr.bf16.mxu1 %v1339_v43 }
  0x98   :  { %545 = vmatpush1.bf16.msra.mxu0 %v1695_v12  ;;  %v1371_v12 = vld [vmem:[#allocation8 + $0x40] sm:$0xff]  }
  0x99   :  { %518 = vmatpush2.bf16.msra.mxu1 %v1341_v44  ;;  %546 = vmatprep.subr.bf16.mxu0 %v1703_v14  ;;  %v594_v14 = vld [vmem:[#allocation5] sm:$0xff] }
  0x9a   :  { %519 = vmatprep.subr.bf16.mxu1 %v1342_v45 }
  0x9c   :  { %547 = vmatpush1.bf16.msra.mxu0 %v1709_v16  ;;  %v596_v16 = vpack.c.bf16 %v595_v15, %v594_v14  ;;  %v1402_v14 = vld [vmem:[#allocation10 + $0xe4] ss:$8 sps:$4 sm:$0xff]   ;;  %v1400_v15 = vld [vmem:[#allocation10 + $0xe0] ss:$8 sps:$4 sm:$0xff]  }
  0x9d   :  { %520 = vmatpush2.bf16.msra.mxu1 %v1344_v46  ;;  %548 = vmatprep.subr.bf16.mxu0 %v1715_v18  ;;  %v1375_v18 = vld [vmem:[#allocation10 + $0x74] ss:$8 sps:$4 sm:$0xff]  }
  0x9e   :  { %521 = vmatprep.subr.bf16.mxu1 %v1345_v47 }
  0xa0   :  { %549 = vmatpush1.bf16.msra.mxu0 %v1719_v20  ;;  %v1376_v20 = vld [vmem:[#allocation10 + $0x60] ss:$8 sps:$4 sm:$0xff]  }
  0xa1   :  { %522 = vmatpush2.bf16.msra.mxu1 %v1347_v48  ;;  %550 = vmatprep.subr.bf16.mxu0 %v1727_v22  ;;  %v1379_v22 = vld [vmem:[#allocation10 + $0x50] ss:$8 sps:$4 sm:$0xff]  }
  0xa2   :  { %523 = vmatprep.subr.bf16.mxu1 %v1348_v49 }
  0xa4   :  { %551 = vmatpush1.bf16.msra.mxu0 %v1733_v24  ;;  %v1382_v24 = vld [vmem:[#allocation10 + $0x40] ss:$8 sps:$4 sm:$0xff]  }
  0xa5   :  { %524 = vmatpush2.bf16.msra.mxu1 %v1350_v50  ;;  %552 = vmatprep.subr.bf16.mxu0 %v1739_v26  ;;  %v1385_v26 = vld [vmem:[#allocation10 + $0x30] ss:$8 sps:$4 sm:$0xff]  }
  0xa6   :  { %525 = vmatprep.subr.bf16.mxu1 %v1351_v51 }
  0xa8   :  { %553 = vmatpush1.bf16.msra.mxu0 %v1745_v28  ;;  %v1388_v28 = vld [vmem:[#allocation10 + $0x20] ss:$8 sps:$4 sm:$0xff]  }
  0xa9   :  { %526 = vmatpush2.bf16.msra.mxu1 %v1353_v52  ;;  %554 = vmatprep.subr.bf16.mxu0 %v1751_v30 }
  0xaa   :  { %527 = vmatprep.subr.bf16.mxu1 %v1354_v53 }
  0xac   :  { %555 = vmatpush1.bf16.msra.mxu0 %v1755_v32 }
  0xad   :  { %528 = vmatpush2.bf16.msra.mxu1 %v1356_v54  ;;  %1249 = vmatprep.subr.bf16.mxu0 %v1357_v61 }
  0xae   :  { %877 = vmatprep.subr.bf16.mxu1 %v1375_v18  ;;  %v1408_v18 = vld [vmem:[#allocation10 + $0xc4] ss:$8 sps:$4 sm:$0xff]  }
  0xaf   :  { %573 = vmatmul.mubr.bf16.vlgmr.msra.gmra.mxu0 %v496_v60 }
  0xb0   :  { %530 = vmatmul.mubr.bf16.vlgmr.msra.gmra.mxu1 %v1764_v42  ;;  %1250 = vmatpush3.bf16.msra.mxu0 %v1358_v62 }
  0xb1   :  { %909 = vmatprep.mubr.bf16.mxu1 %v1599_v0  ;;  %1251 = vmatprep.subr.bf16.mxu0 %v1359_v63 }
  0xb2   :  { %758 = vmatprep.mubr.bf16.mxu0 %v596_v16  ;;  %878 = vmatpush1.bf16.msra.mxu1 %v1373_v17  ;;  %v1405_v16 = vld [vmem:[#allocation10 + $0xd4] ss:$8 sps:$4 sm:$0xff]   ;;  %v1403_v17 = vld [vmem:[#allocation10 + $0xd0] ss:$8 sps:$4 sm:$0xff]  }
  0xb3   :  { %879 = vmatprep.subr.bf16.mxu1 %v1378_v19  ;;  %v1406_v19 = vld [vmem:[#allocation10 + $0xc0] ss:$8 sps:$4 sm:$0xff]  }
  0xb4   :  { %1252 = vmatpush3.bf16.msra.mxu0 %v1360_v1 }
  0xb5   :  { %1253 = vmatprep.subr.bf16.mxu0 %v1361_v2  ;;  %v1393_v2 = vld [vmem:[#allocation10 + $0x14] ss:$8 sps:$4 sm:$0xff]  }
  0xb6   :  { %880 = vmatpush1.bf16.msra.mxu1 %v1376_v20  ;;  %v1411_v20 = vld [vmem:[#allocation10 + $0xb4] ss:$8 sps:$4 sm:$0xff]  }
  0xb7   :  { %881 = vmatprep.subr.bf16.mxu1 %v1381_v21  ;;  %v1409_v21 = vld [vmem:[#allocation10 + $0xb0] ss:$8 sps:$4 sm:$0xff]  }
  0xb8   :  { %1254 = vmatpush3.bf16.msra.mxu0 %v1362_v3  ;;  %v1391_v3 = vld [vmem:[#allocation10 + $0x10] ss:$8 sps:$4 sm:$0xff]  }
  0xb9   :  { %1255 = vmatprep.subr.bf16.mxu0 %v1363_v4  ;;  %v1396_v4 = vld [vmem:[#allocation10 + $0x4] ss:$8 sps:$4 sm:$0xff]  }
  0xba   :  { %882 = vmatpush1.bf16.msra.mxu1 %v1379_v22  ;;  %v1414_v22 = vld [vmem:[#allocation10 + $0xa4] ss:$8 sps:$4 sm:$0xff]  }
  0xbb   :  { %883 = vmatprep.subr.bf16.mxu1 %v1384_v23  ;;  %v1412_v23 = vld [vmem:[#allocation10 + $0xa0] ss:$8 sps:$4 sm:$0xff]  }
  0xbc   :  { %1256 = vmatpush3.bf16.msra.mxu0 %v1364_v5  ;;  %v1394_v5 = vld [vmem:[#allocation10] ss:$8 sps:$4 sm:$0xff]  }
  0xbd   :  { %1257 = vmatprep.subr.bf16.mxu0 %v1365_v6 }
  0xbe   :  { %884 = vmatpush1.bf16.msra.mxu1 %v1382_v24  ;;  %v1417_v24 = vld [vmem:[#allocation10 + $0x94] ss:$8 sps:$4 sm:$0xff]  }
  0xbf   :  { %885 = vmatprep.subr.bf16.mxu1 %v1387_v25  ;;  %v1415_v25 = vld [vmem:[#allocation10 + $0x90] ss:$8 sps:$4 sm:$0xff]  }
  0xc0   :  { %1258 = vmatpush3.bf16.msra.mxu0 %v1366_v7 }
  0xc1   :  { %1259 = vmatprep.subr.bf16.mxu0 %v1367_v8 }
  0xc2   :  { %886 = vmatpush1.bf16.msra.mxu1 %v1385_v26  ;;  %v1420_v26 = vld [vmem:[#allocation10 + $0x84] ss:$8 sps:$4 sm:$0xff]  }
  0xc3   :  { %887 = vmatprep.subr.bf16.mxu1 %v1390_v27  ;;  %v1418_v27 = vld [vmem:[#allocation10 + $0x80] ss:$8 sps:$4 sm:$0xff]  }
  0xc4   :  { %1260 = vmatpush3.bf16.msra.mxu0 %v1368_v9 }
  0xc5   :  { %1261 = vmatprep.subr.bf16.mxu0 %v1369_v10 }
  0xc6   :  { %888 = vmatpush1.bf16.msra.mxu1 %v1388_v28  ;;  %v787_v28 = vlaneseq }
  0xc7   :  { %889 = vmatprep.subr.bf16.mxu1 %v1393_v2 }
  0xc8   :  { %1262 = vmatpush3.bf16.msra.mxu0 %v1370_v11 }
  0xc9   :  { %1263 = vmatprep.subr.bf16.mxu0 %v1371_v12 }
  0xca   :  { %890 = vmatpush1.bf16.msra.mxu1 %v1391_v3 }
  0xcb   :  { %891 = vmatprep.subr.bf16.mxu1 %v1396_v4 }
  0xcc   :  { %1264 = vmatpush3.bf16.msra.mxu0 %v1372_v13  ;;  %v1397_v13 = vld [vmem:[#allocation10 + $0xf0] ss:$8 sps:$4 sm:$0xff]  }
  0xce   :  { %892 = vmatpush1.bf16.msra.mxu1 %v1394_v5 }
 0x130   :  { %v479_v29 = vpop.f32.mrf.mxu1 }
 0x132   :  { %v481_v31 = vpop.f32.mrf.mxu1 }
 0x134   :  { %v483_v33 = vpop.f32.mrf.mxu1 }
 0x136   :  { %v485_v35 = vpop.f32.mrf.mxu1 }
 0x14f   :  { %v436_v30 = vpop.f32.mrf.mxu0 }
 0x150   :  { %v480_v42 = vadd.f32 %v479_v29, %v436_v30  ;;  %v788_v29 = vshrl.u32 %v787_v28, 7 }
 0x151   :  { %v438_v32 = vpop.f32.mrf.mxu0 }
 0x152   :  { %v482_v43 = vadd.f32 %v481_v31, %v438_v32  ;;  %v793_v30 = vsub.s32 1, %v788_v29  ;;  %v785_v31 = vld [vmem:[#allocation11 + $0x1] ss:$8 sm:$0x3] }
 0x153   :  { %v440_v34 = vpop.f32.mrf.mxu0 }
 0x154   :  { %v484_v52 = vadd.f32 %v483_v33, %v440_v34  ;;  %v794_v32 = vrot.slane %v785_v31, %v793_v30 }
 0x155   :  { %v442_v36 = vpop.f32.mrf.mxu0 }
 0x156   :  { %v486_v53 = vadd.f32 %v485_v35, %v442_v36 }
 0x16f   :  { %v574_v38 = vpop.f32.mrf.mxu0 }
 0x170   :  { %v531_v37 = vpop.f32.mrf.mxu1 }
 0x171   :  { %v575_v39 = vadd.f32 %v574_v38, %v531_v37  ;;  %v576_v41 = vpop.f32.mrf.mxu0 }
 0x172   :  { %v533_v40 = vpop.f32.mrf.mxu1 }
 0x173   :  { %v577_v44 = vadd.f32 %v576_v41, %v533_v40  ;;  %v578_v46 = vpop.f32.mrf.mxu0  ;;  %v583_v47 = vmax.f32 %v480_v42, %v575_v39 }
 0x174   :  { %v535_v45 = vpop.f32.mrf.mxu1 }
 0x175   :  { %v584_v48 = vmax.f32 %v482_v43, %v577_v44  ;;  %v579_v49 = vadd.f32 %v578_v46, %v535_v45  ;;  %v580_v51 = vpop.f32.mrf.mxu0  ;;  %v789_v44 = vsub.s32 0, %v788_v29 }
 0x176   :  { %v537_v50 = vpop.f32.mrf.mxu1 }
 0x177   :  { %v587_v54 = vmax.f32 %v583_v47, %v584_v48  ;;  %v581_v55 = vadd.f32 %v580_v51, %v537_v50  ;;  %v585_v57 = vmax.f32 %v484_v52, %v579_v49  ;;  %v790_v46 = vrot.slane %v785_v31, %v789_v44 }
 0x179   :  { %v586_v58 = vmax.f32 %v486_v53, %v581_v55  ;;  %v590_v59 = vadd.f32 %v589_v56, %v587_v54 }
 0x17b   :  { %v588_v60 = vmax.f32 %v585_v57, %v586_v58  ;;  %v592_v62 = vmax.f32 %v590_v59, 0.0  ;;  %v957_v58 = vld [vmem:[#allocation11 + $0x2] ss:$8 sm:$0x3] }
 0x17c   :  { %v966_v59 = vrot.slane %v957_v58, %v793_v30 }
 0x17d   :  { %v591_v61 = vadd.f32 %v589_v56, %v588_v60 }
 0x17f   :  { %v593_v63 = vmax.f32 %v591_v61, 0.0 }
 0x181   :  { %v597_v1 = vpack.c.bf16 %v593_v63, %v592_v62 }
 0x183   :  { %759 = vmatmul.mubr.bf16.vlgmr.msra.gmra.mxu0 %v597_v1 }
 0x184   :  { %1081 = vmatprep.mubr.bf16.mxu0 %v1599_v0  ;;  %v1399_v0 = vld [vmem:[#allocation10 + $0xf4] ss:$8 sps:$4 sm:$0xff]  }
 0x185   :  { %1049 = vmatprep.subr.bf16.mxu0 %v1399_v0 }
 0x186   :  { %1050 = vmatpush1.bf16.msra.mxu0 %v1397_v13 }
 0x187   :  { %1051 = vmatprep.subr.bf16.mxu0 %v1402_v14 }
 0x18a   :  { %1052 = vmatpush1.bf16.msra.mxu0 %v1400_v15 }
 0x18b   :  { %1053 = vmatprep.subr.bf16.mxu0 %v1405_v16 }
 0x18e   :  { %1054 = vmatpush1.bf16.msra.mxu0 %v1403_v17 }
 0x18f   :  { %1055 = vmatprep.subr.bf16.mxu0 %v1408_v18 }
 0x192   :  { %1056 = vmatpush1.bf16.msra.mxu0 %v1406_v19 }
 0x193   :  { %1057 = vmatprep.subr.bf16.mxu0 %v1411_v20 }
 0x196   :  { %1058 = vmatpush1.bf16.msra.mxu0 %v1409_v21 }
 0x197   :  { %1059 = vmatprep.subr.bf16.mxu0 %v1414_v22 }
 0x19a   :  { %1060 = vmatpush1.bf16.msra.mxu0 %v1412_v23 }
 0x19b   :  { %1061 = vmatprep.subr.bf16.mxu0 %v1417_v24 }
 0x19e   :  { %1062 = vmatpush1.bf16.msra.mxu0 %v1415_v25 }
 0x19f   :  { %1063 = vmatprep.subr.bf16.mxu0 %v1420_v26 }
 0x1a2   :  { %1064 = vmatpush1.bf16.msra.mxu0 %v1418_v27 }
 0x243   :  { %v1265_v6 = vpop.f32.mrf.mxu0 }
 0x245   :  { %v1266_v7 = vpop.f32.mrf.mxu0 }
 0x246   :  { %v1802_v10 = vadd.f32 %v1266_v7, %v1265_v6 }
 0x247   :  { %v1268_v8 = vpop.f32.mrf.mxu0 }
 0x249   :  { %v1269_v9 = vpop.f32.mrf.mxu0 }
 0x24a   :  { %v1804_v11 = vadd.f32 %v1269_v9, %v1268_v8  ;;  %v962_v9 = vrot.slane %v957_v58, %v789_v44 }
 0x24c   :  { %v767_v12 = vpack.c.bf16 %v1804_v11, %v1802_v10 }
 0x24e   :  { %910 = vmatmul.mubr.bf16.vlgmr.msra.gmra.mxu1 %v767_v12 }
 0x30e   :  { %v911_v33 = vpop.f32.mrf.mxu1 }
 0x30f   :  { %v912_v47 = vadd.f32 %v911_v33, %v790_v46 }
 0x310   :  { %v913_v34 = vpop.f32.mrf.mxu1 }
 0x311   :  { %v914_v35 = vadd.f32 %v913_v34, %v794_v32  ;;  %v932_v50 = vsub.f32 %v912_v47, %v1802_v10 }
 0x312   :  { %v915_v36 = vpop.f32.mrf.mxu1 }
 0x313   :  { %v1220_v37 = vmul.f32 -1.442695, %v914_v35  ;;  %v916_v48 = vadd.f32 %v915_v36, %v790_v46 }
 0x314   :  { %v917_v38 = vpop.f32.mrf.mxu1 }
 0x315   :  { %1421 = vpow2.f32 %v1220_v37  ;;  %v918_v39 = vadd.f32 %v917_v38, %v794_v32  ;;  %v933_v51 = vsub.f32 %v916_v48, %v1804_v11 }
 0x317   :  { %v1221_v40 = vmul.f32 -1.442695, %v918_v39 }
 0x319   :  { %1423 = vpow2.f32 %v1221_v40 }
 0x322   :  { %v1422_v41 = vpop.eup %1421 }
 0x323   :  { %v926_v42 = vadd.f32 1.0, %v1422_v41 }
 0x325   :  { %1425 = vrcp.f32 %v926_v42 }
 0x326   :  { %v1424_v43 = vpop.eup %1423 }
 0x327   :  { %v927_v45 = vadd.f32 1.0, %v1424_v43 }
 0x329   :  { %1427 = vrcp.f32 %v927_v45 }
 0x332   :  { %v1426_v49 = vpop.eup %1425 }
 0x333   :  { %v934_v52 = vmul.f32 %v1426_v49, %v932_v50 }
 0x335   :  { %v936_v55 = vadd.f32 %v1802_v10, %v934_v52 }
 0x336   :  { %v1428_v53 = vpop.eup %1427 }
 0x337   :  { %v935_v54 = vmul.f32 %v1428_v53, %v933_v51 }
 0x339   :  { %v937_v56 = vadd.f32 %v1804_v11, %v935_v54 }
 0x33b   :  { %v938_v57 = vpack.c.bf16 %v937_v56, %v936_v55 }
 0x33d   :  { %1082 = vmatmul.mubr.bf16.vlgmr.msra.gmra.mxu0 %v938_v57 }
 0x3fd   :  { %v1083_v60 = vpop.f32.mrf.mxu0 }
 0x3fe   :  { %v1084_v10 = vadd.f32 %v1083_v60, %v962_v9 }
 0x3ff   :  { %v1085_v61 = vpop.f32.mrf.mxu0 }
 0x400   :  { %v1086_v62 = vadd.f32 %v1085_v61, %v966_v59  ;;  %v1104_v0 = vsub.f32 %v1084_v10, %v936_v55 }
 0x401   :  { %v1087_v63 = vpop.f32.mrf.mxu0 }
 0x402   :  { %v1238_v1 = vmul.f32 -1.442695, %v1086_v62  ;;  %v1088_v11 = vadd.f32 %v1087_v63, %v962_v9 }
 0x403   :  { %v1089_v2 = vpop.f32.mrf.mxu0 }
 0x404   :  { %1429 = vpow2.f32 %v1238_v1  ;;  %v1090_v3 = vadd.f32 %v1089_v2, %v966_v59  ;;  %v1105_v13 = vsub.f32 %v1088_v11, %v937_v56 }
 0x406   :  { %v1239_v4 = vmul.f32 -1.442695, %v1090_v3 }
 0x408   :  { %1431 = vpow2.f32 %v1239_v4 }
 0x411   :  { %v1430_v5 = vpop.eup %1429 }
 0x412   :  { %v1098_v6 = vadd.f32 1.0, %v1430_v5 }
 0x414   :  { %1433 = vrcp.f32 %v1098_v6 }
 0x415   :  { %v1432_v7 = vpop.eup %1431 }
 0x416   :  { %v1099_v8 = vadd.f32 1.0, %v1432_v7 }
 0x418   :  { %1435 = vrcp.f32 %v1099_v8 }
 0x421   :  { %v1434_v12 = vpop.eup %1433 }
 0x422   :  { %v1106_v14 = vmul.f32 %v1434_v12, %v1104_v0 }
 0x424   :  { %v1108_v17 = vadd.f32 %v1106_v14, %v936_v55 }
 0x425   :  { %v1436_v15 = vpop.eup %1435 }
 0x426   :  { %v1107_v16 = vmul.f32 %v1436_v15, %v1105_v13 }
 0x428   :  { %v1109_v18 = vadd.f32 %v1107_v16, %v937_v56 }
 0x42a   :  { %v1247_v19 = vpack.c.bf16 %v1109_v18, %v1108_v17 }
 0x42c   :  { %1248 = vst [vmem:[#allocation13] sm:$0xff] %v1247_v19  }
 0x42d   :  { %1568 = shalt.err (!%p1565_p6)
}
 0x42e   :  { %1131 = dma.vmem_to_hbm [thread:$0]  %s1126_s5, 128, %s1824_s6, [#allocation4], %s1591_s7, %s1591_s7, %s1592_s8  }
 0x42f   :  { %1585 = dma.done.wait [#allocation4], 128  }
 0x430   :  { %1586 = vsyncadd [#allocation4], 4294967168 }
 0x431   :  { %1135 = vsyncpa [#allocation3], 1 }
 0x432   :  { %1136 = vsyncpa [#allocation6], 1 }
 0x433   :  { %1137 = vsyncpa [#allocation9], 1 }
 0x434   :  { %1138 = vsyncpa [#allocation12], 1 }
 0x435   :  { %1139 = vsyncpa [#allocation4], 1 }

</bundles_post_ra>
